<compile_context>
chip_gen: v6e
topology: v6e:2x2x1
jax: 0.10.0
libtpu: 0.0.40
codegen_flags: <defaults>
</compile_context>

<pallas_src>
import functools

import jax
import jax.numpy as jnp
from jax.experimental import pallas as pl
from jax.experimental.pallas import tpu as pltpu


def _subsample_kernel_slim(x_ref, o_ref):
    """Fast path: the BlockSpec already delivers only the kept rows/columns.

    x_ref: (1, R_out, 1, R_out, C)   o_ref: (1, R_out, R_out, C)
    """
    o_ref[0] = x_ref[0, :, 0, :, :]


def _subsample_kernel_cols(x_ref, o_ref, *, stride, r_out):
    """General path (C not a multiple of 128): kept rows arrive via the
    BlockSpec; the column subsample is a reshape + unit slice on the value.

    x_ref: (1, R_out, 1, R_out*stride, C)   o_ref: (1, R_out, R_out, C)
    """
    x = x_ref[0, :, 0, :, :]                          # (R_out, R_out*stride, C)
    c = x.shape[-1]
    o_ref[0] = x.reshape(r_out, r_out, stride, c)[:, :, 0, :]


def subsample(x, *, stride, resolution):
    """Equivalent of Subsample(stride, resolution).forward(x), x: (B, N, C)."""
    B, N, C = x.shape
    R = resolution
    assert N == R * R, f"N={N} must equal resolution**2={R * R}"
    R_out = -(-R // stride)          # ceil(R / stride), matches python [::stride]
    R_pad = R_out * stride

    x4 = x.reshape(B, R, R, C)
    if R_pad != R:
        # Pad rows/cols so the strided pick becomes a pure (free) reshape.
        # The padded rows/cols are never selected, so their values don't matter.
        x4 = jnp.pad(x4, ((0, 0), (0, R_pad - R), (0, R_pad - R), (0, 0)))

    itemsize = jnp.dtype(x.dtype).itemsize
    cost = pl.CostEstimate(
        flops=0,
        transcendentals=0,
        bytes_accessed=2 * B * R_out * R_out * C * itemsize,
    )

    out_shape = jax.ShapeDtypeStruct((B, R_out, R_out, C), x.dtype)
    out_spec = pl.BlockSpec((1, R_out, R_out, C), lambda b: (b, 0, 0, 0))

    if C % 128 == 0 or stride == 1:
        # Fast path: fold the column subsample into the last-dim block index so
        # the DMA fetches exactly the kept R_out*R_out*C elements per image.
        x_in = x4.reshape(B, R_out, stride, R_out, stride * C)
        in_spec = pl.BlockSpec((1, R_out, 1, R_out, C),
                               lambda b: (b, 0, 0, 0, 0))
        kernel = _subsample_kernel_slim
    else:
        # General path: read all (padded) columns of the kept rows; select
        # columns in-kernel.  Block last-two dims equal the full array dims,
        # so any channel count is legal.
        x_in = x4.reshape(B, R_out, stride, R_pad, C)
        in_spec = pl.BlockSpec((1, R_out, 1, R_pad, C),
                               lambda b: (b, 0, 0, 0, 0))
        kernel = functools.partial(_subsample_kernel_cols,
                                   stride=stride, r_out=R_out)

    out4 = pl.pallas_call(
        kernel,
        out_shape=out_shape,
        grid=(B,),
        in_specs=[in_spec],
        out_specs=out_spec,
        compiler_params=pltpu.CompilerParams(
            dimension_semantics=("parallel",),
        ),
        cost_estimate=cost,
    )(x_in)

    return out4.reshape(B, R_out * R_out, C)


def subsample_ref(x, *, stride, resolution):
    """Pure-JAX reference mirroring the PyTorch forward exactly."""
    B, N, C = x.shape
    R = resolution
    return x.reshape(B, R, R, C)[:, ::stride, ::stride].reshape(B, -1, C)


if __name__ == "__main__":
    key = jax.random.PRNGKey(0)

    # Case 1 (fast path, LeViT-like widths): B=2, resolution=8 (N=64), C=128, stride=2.
    B, R, C, STRIDE = 2, 8, 128, 2
    x = jax.random.normal(key, (B, R * R, C), dtype=jnp.float32)
    out = jax.block_until_ready(subsample(x, stride=STRIDE, resolution=R))
    ref = subsample_ref(x, stride=STRIDE, resolution=R)
    assert out.shape == ref.shape, (out.shape, ref.shape)
    assert out.dtype == ref.dtype, (out.dtype, ref.dtype)
    assert jnp.array_equal(out, ref), "Pallas Subsample (fast path) mismatch vs reference"

    # Case 2 (general path: odd resolution like LeViT's 7, small C): B=2, R=7, C=32.
    B2, R2, C2, S2 = 2, 7, 32, 2
    x2 = jax.random.normal(jax.random.PRNGKey(0), (B2, R2 * R2, C2), dtype=jnp.float32)
    out2 = jax.block_until_ready(subsample(x2, stride=S2, resolution=R2))
    ref2 = subsample_ref(x2, stride=S2, resolution=R2)
    assert out2.shape == ref2.shape, (out2.shape, ref2.shape)
    assert jnp.array_equal(out2, ref2), "Pallas Subsample (general path) mismatch vs reference"

    print("KERNEL_OK")
</pallas_src>

<mosaic_0001>
module attributes {stable_mosaic.version = 11 : i64} {
  func.func @_subsample_kernel_slim(%arg0: i32, %arg1: memref<1x4x1x4x128xf32, #tpu.memory_space<vmem>>, %arg2: memref<1x4x4x128xf32, #tpu.memory_space<vmem>>) attributes {dimension_semantics = [#tpu.dimension_semantics<parallel>], iteration_bounds = array<i64: 2>, scalar_prefetch = 0 : i64, scratch_operands = 0 : i64, tpu.core_type = #tpu.core_type<tc>, window_params = [{transform_indices = @transform_0, window_bounds = array<i64: 1, 4, 1, 4, 128>}, {transform_indices = @transform_1, window_bounds = array<i64: 1, 4, 4, 128>}]} {
    %c0 = arith.constant 0 : index
    %c0_0 = arith.constant 0 : index
    %c0_1 = arith.constant 0 : index
    %c0_2 = arith.constant 0 : index
    %c0_3 = arith.constant 0 : index
    %0 = vector.load %arg1[%c0, %c0_0, %c0_1, %c0_2, %c0_3] : memref<1x4x1x4x128xf32, #tpu.memory_space<vmem>>, vector<1x4x1x4x128xf32>
    %1 = vector.shape_cast %0 : vector<1x4x1x4x128xf32> to vector<4x4x128xf32>
    %c0_4 = arith.constant 0 : index
    %c0_5 = arith.constant 0 : index
    %c0_6 = arith.constant 0 : index
    %c0_7 = arith.constant 0 : index
    %2 = vector.load %arg2[%c0_4, %c0_5, %c0_6, %c0_7] : memref<1x4x4x128xf32, #tpu.memory_space<vmem>>, vector<1x4x4x128xf32>
    %3 = vector.shape_cast %2 : vector<1x4x4x128xf32> to vector<4x4x128xf32>
    %4 = vector.shape_cast %1 : vector<4x4x128xf32> to vector<1x4x4x128xf32>
    tpu.vector_store %arg2[%c0_4, %c0_5, %c0_6, %c0_7], %4 {strides = array<i32>} : memref<1x4x4x128xf32, #tpu.memory_space<vmem>>, vector<1x4x4x128xf32>,
    return
  }
  func.func @transform_0(%arg0: i32) -> (i32, i32, i32, i32, i32) {
    %c0_i32 = arith.constant 0 : i32
    %c0_i32_0 = arith.constant 0 : i32
    %c0_i32_1 = arith.constant 0 : i32
    %c0_i32_2 = arith.constant 0 : i32
    %c0_i32_3 = arith.constant 0 : i32
    return %arg0, %c0_i32, %c0_i32_0, %c0_i32_1, %c0_i32_2 : i32, i32, i32, i32, i32
  }
  func.func @transform_1(%arg0: i32) -> (i32, i32, i32, i32) {
    %c0_i32 = arith.constant 0 : i32
    %c0_i32_0 = arith.constant 0 : i32
    %c0_i32_1 = arith.constant 0 : i32
    %c0_i32_2 = arith.constant 0 : i32
    return %arg0, %c0_i32, %c0_i32_0, %c0_i32_1 : i32, i32, i32, i32
  }
}

</mosaic_0001>

<bundles_post_ra>
// kernel: tpu_custom_call.1
= control target key start
LH: loop header
LB: loop body
LE: loop exit
PB: predicated region body
PF: predicated region fallthrough
CT: control target
= control target key end

     0   :  { %6 = vsyncpa [#allocation3], 0  ;;  %s564_s0 = inlined_call_operand.hbm [shape: f32[2,4,2,4,256], index: 0, kind: input, shape index: {}]   ;;  %s565_s1 = inlined_call_operand.hbm [shape: f32[2,4,4,128], index: 1, kind: output, shape index: {}]  }
   0x1   :  { %8 = vsyncpa [#allocation3 + $0x1], 0 }
   0x2   :  { %9 = vsyncpa [#allocation4], 0 }
   0x3   :  { %11 = vsyncpa [#allocation4 + $0x1], 0  ;;  %s408_s6 = smov 0   ;;  %s410_s7 = smov 0  }
   0x4   :  { %s412_s8 = smov 0   ;;  %s414_s9 = smov 0  }
   0x5 LB: > { %s429_s10 = sadd.s32 4294967295, %s389_s9   ;;  %s230_s11 = sadd.s32 4294967294, %s389_s9   ;;  %s389_s9 = sphi %s414_s9, %s581_s9   ;;  %s385_s8 = sphi %s412_s8, %s580_s8   ;;  %s381_s7 = sphi %s410_s7, %s579_s7   ;;  %s377_s6 = sphi %s408_s6, %s578_s6  }
   0x6   : > { %s433_s12 = sadd.s32 1, %s389_s9   ;;  %s24_s13 = sadd.s32 1, %s385_s8 }
   0x7   : > { %s21_s14 = ssub.s32 %s389_s9, %s433_s12  ;;  %p31_p0 = scmp.ne.s32.totalorder %s385_s8, %s381_s7 }
   0x8   : > { %p22_p1 = scmp.eq.s32.totalorder %s21_s14, 0  ;;  %p32_p2 = scmp.eq.s32.totalorder %s389_s9, 0 }
   0x9   : > { %p37_p3 = scmp.ne.s32.totalorder %s381_s7, %s377_s6  ;;  %p38_p4 = scmp.eq.s32.totalorder %s429_s10, 0 }
   0xa   : > { %s445_s15 = scalar_select %p22_p1, %s385_s8, %s24_s13  }
   0xb   : > { %p447_p5 = por %p32_p2, %p31_p0  ;;  %p451_p6 = por %p38_p4, %p37_p3 }
   0xc   : > { %p61_p7 = scmp.eq.s32.totalorder %s429_s10, 1  ;;  %p67_p8 = scmp.eq.s32.totalorder %s230_s11, 1 }
   0xd   : > { %s569_s17 = scalar_select %p451_p6, 1, 0 }
   0xe   : > { %p258_p10 = scmp.lt.s32.totalorder %s389_s9, 2  ;;  %p458_p11 = por %p61_p7, %p31_p0 }
   0xf   : > { %p462_p12 = por %p67_p8, %p37_p3  ;;  %s87_s20 = sand.u32 1, %s385_s8  }
  0x10   : > { %s570_s18 = scalar_select %p458_p11, 1, 0 }
  0x11   : > { %s571_s19 = scalar_select %p462_p12, 1, 0 }
  0x12   : > { %s244_s21 = sshll.u32 %s389_s9, 10  ;;  %s233_s22 = sshll.u32 %s87_s20, 4 }
  0x13   : > { %s471_s25 = scalar_lea.hbm %s564_s0, %s244_s21  ;;  %s91_s26 = scalar_lea.vmem [#allocation2], %s233_s22 }
  0x14   : > { %s98_s27 = sshll.u32 %s91_s26, 4  ;;  %p475_p13 = pnand %p258_p10, %p447_p5  ;;  %s479_s27 = int_to_ptr.vmem [resolvable:$true] %s98_s27 }
  0x15   : > { %s482_s29 = scalar_lea.sflag [#allocation3], %s87_s20  ;;  %s297_s30 = scalar_lea.hbm %s471_s25, 256 }
  0x16   : > { %p298_p1 = scmp.ne.s32.totalorder %s471_s25, %s297_s30  ;;  %p299_p2 = pneg %p475_p13 }
  0x17   : > { %s302_s4 = scalar_lea.hbm %s564_s0, 2048  ;;  %p303_p5 = scmp.lt.s32.totalorder %s471_s25, %s564_s0 }
  0x18   : > { %p300_p3 = pnand %p299_p2, %p298_p1  ;;  %p304_p7 = scmp.lt.s32.totalorder %s302_s4, %s297_s30 }
  0x1a   : > { %p301_p4 = pneg %p300_p3  ;;  %p305_p8 = por %p304_p7, %p303_p5 }
  0x1c   : > { %p306_p10 = pnand %p305_p8, %p301_p4 }
  0x1e   : > { %309 = shalt.err (!%p306_p10)
}
  0x1f   : > { %s310_s13 = scalar_lea.vmem %s479_s27, 256  ;;  %s391_s14 = smov [#allocation2]  }
  0x20   : > { %p311_p9 = scmp.ne.s32.totalorder %s479_s27, %s310_s13  ;;  %s315_s16 = sshll.u32 %s391_s14, 4  ;;  %s316_s16 = int_to_ptr.vmem [resolvable:$false] %s315_s16 }
  0x21   : > { %s317_s20 = scalar_lea.vmem %s316_s16, 512  ;;  %p318_p3 = scmp.lt.s32.totalorder %s479_s27, %s316_s16 }
  0x22   : > { %p313_p0 = pnand %p311_p9, %p299_p2  ;;  %p319_p12 = scmp.lt.s32.totalorder %s317_s20, %s310_s13 }
  0x24   : > { %p314_p1 = pneg %p313_p0  ;;  %p320_p11 = por %p319_p12, %p318_p3 }
  0x26   : > { %p321_p6 = pnand %p320_p11, %p314_p1 }
  0x28   : > { %324 = shalt.err (!%p321_p6)
}
  0x29   : > { %s392_s21 = smov 256   ;;  %s393_s22 = smov 64  }
  0x2a   : > { %s394_s23 = smov 4   ;;  %p106_p9 = scmp.lt.s32.totalorder %s389_s9, 3 }
  0x2b   : > { %253 = dma.hbm_to_vmem [thread:$0]  (!%p475_p13), %s471_s25, 256, %s479_s27, %s482_s29, %s392_s21, %s393_s22, %s394_s23  }
  0x2c   : > { %p573_p0 = scmp.ge.s32.totalorder %s389_s9, 1 }
  0x2e   : > { %p107_p2 = pnand %p573_p0, %p106_p9 }
  0x2f   : > { %s507_s24 = sand.u32 (!%p107_p2), 1, %s381_s7   ;;  %p574_p6 = scmp.ne.s32.totalorder (!%p107_p2), %s569_s17, 0 }
  0x30   : > { %110 = sbr.rel (%p107_p2) target bundleno = 80 (0x50), region = 24  ;;  %s237_s26 = sshll.u32 (!%p107_p2), %s507_s24, 4 }
  0x31   : > { %s113_s30 = scalar_lea.sflag (!%p107_p2), [#allocation3], %s507_s24  ;;  %s116_s2 = scalar_lea.vmem (!%p107_p2), [#allocation2], %s237_s26 }
  0x35   : > { %368 = dma.done.wait (%p574_p6), %s113_s30, 256  }
  0x36   : > { %370 = vsyncadd (%p574_p6), %s113_s30, 4294967040  ;;  %s134_s25 = scalar_lea.vmem [#allocation5], %s237_s26  ;;  %s245_s28 = sshll.u32 %s429_s10, 8  ;;  %v135_v0 = vld [vmem:[%s116_s2] sm:$0xff]   ;;  %v137_v1 = vld [vmem:[%s116_s2 + $0x8] sm:$0xff]  }
  0x37   : > { %s157_s27 = sshll.u32 %s134_s25, 4  ;;  %s521_s4 = scalar_lea.hbm %s565_s1, %s245_s28  ;;  %139 = vst [vmem:[%s134_s25] sm:$0xff] %v135_v0   ;;  %141 = vst [vmem:[%s134_s25 + $0x8] sm:$0xff] %v137_v1   ;;  %s516_s27 = int_to_ptr.vmem [resolvable:$true] %s157_s27 }
  0x38   : > { %s144_s17 = scalar_lea.sflag [#allocation4], %s507_s24  ;;  %s325_s5 = scalar_lea.vmem %s516_s27, 256 }
  0x39   : > { %p326_p11 = scmp.ne.s32.totalorder %s516_s27, %s325_s5  ;;  %p575_p12 = scmp.ne.s32.totalorder %s570_s18, 0 }
  0x3a   : > { %s395_s10 = smov [#allocation5]  }
  0x3b   : > { %p327_p13 = pnand %p326_p11, %p575_p12  ;;  %s329_s11 = sshll.u32 %s395_s10, 4  ;;  %s330_s11 = int_to_ptr.vmem [resolvable:$false] %s329_s11 }
  0x3c   : > { %s331_s13 = scalar_lea.vmem %s330_s11, 512  ;;  %p332_p5 = scmp.lt.s32.totalorder %s516_s27, %s330_s11 }
  0x3d   : > { %p328_p4 = pneg %p327_p13  ;;  %p333_p7 = scmp.lt.s32.totalorder %s331_s13, %s325_s5 }
  0x3f   : > { %p334_p8 = por %p333_p7, %p332_p5 }
  0x41   : > { %p335_p10 = pnand %p334_p8, %p328_p4 }
  0x43   : > { %338 = shalt.err (!%p335_p10)
}
  0x44   : > { %s339_s14 = scalar_lea.hbm %s521_s4, 256  ;;  %s343_s21 = scalar_lea.hbm %s565_s1, 512 }
  0x45   : > { %p340_p1 = scmp.ne.s32.totalorder %s521_s4, %s339_s14  ;;  %p344_p0 = scmp.lt.s32.totalorder %s521_s4, %s565_s1 }
  0x46   : > { %p345_p2 = scmp.lt.s32.totalorder %s343_s21, %s339_s14 }
  0x47   : > { %p341_p3 = pnand %p340_p1, %p575_p12 }
  0x48   : > { %p346_p6 = por %p345_p2, %p344_p0 }
  0x49   : > { %p342_p9 = pneg %p341_p3 }
  0x4b   : > { %p347_p11 = pnand %p346_p6, %p342_p9 }
  0x4d   : > { %350 = shalt.err (!%p347_p11)
}
  0x4e   : > { %s396_s26 = smov 64   ;;  %s397_s30 = smov 4  }
  0x4f   : > { %248 = dma.vmem_to_hbm [thread:$0]  (%p575_p12), %s516_s27, 256, %s521_s4, %s144_s17, %s396_s26, %s396_s26, %s397_s30  }
  0x50 PF: > { %s172_s2 = sand.u32 1, %s377_s6   ;;  %p576_p13 = scmp.ne.s32.totalorder %s571_s19, 0 }
  0x51   : > { %p577_p4 = scmp.ge.s32.totalorder %s389_s9, 2  ;;  %s173_s25 = scalar_lea.sflag [#allocation4], %s172_s2 }
  0x53   : > { %p255_p5 = pnand %p577_p4, %p576_p13 }
  0x55   : > { %p256_p7 = pneg %p255_p5 }
  0x57   : > { %372 = dma.done.wait (%p256_p7), %s173_s25, 256  }
  0x58   : > { %374 = vsyncadd (%p256_p7), %s173_s25, 4294967040  ;;  %p14_p8 = scmp.ge.s32.totalorder %s433_s12, 4   ;;  %s578_s6 = smov %s381_s7 }
  0x59   : > { %s579_s7 = smov %s385_s8  ;;  %s580_s8 = smov %s445_s15 }
  0x5a   : > { %s581_s9 = smov %s433_s12  ;;  %16 = sbr.rel (!%p14_p8) target bundleno = 5 (0x5), region = 69 }
  0x5f   :  { %178 = vsyncpa [#allocation3], 1 }
  0x60   :  { %180 = vsyncpa [#allocation3 + $0x1], 1 }
  0x61   :  { %181 = vsyncpa [#allocation4], 1 }
  0x62   :  { %183 = vsyncpa [#allocation4 + $0x1], 1 }

</bundles_post_ra>
